<compile_context>
chip_gen: v7x
topology: tpu7x:2x2x1
jax: 0.10.0
libtpu: 0.0.40
codegen_flags: <defaults>
</compile_context>

<pallas_src>
import functools

import jax
import jax.numpy as jnp
from jax.experimental import pallas as pl
from jax.experimental.pallas import tpu as pltpu

LANES = 128                      # lane width (last dim of every block)
ROW_TILE = 4096                  # rows per grid step (2 MiB/input/buffer, f32)
DEFAULT_SMALL_INPUT = 262_144    # below this many elements use plain XLA


def _dice_partial_kernel(yt_ref, yp_ref, out_ref, acc_i_ref, acc_s_ref, *,
                         rows, tile_rows, nsteps, need_mask):
    """Accumulates {intersection, sum(y_pred) + sum(y_true)} over the grid."""
    j = pl.program_id(0)         # reduction step ("arbitrary")

    @pl.when(j == 0)
    def _init():
        acc_i_ref[...] = jnp.zeros_like(acc_i_ref)
        acc_s_ref[...] = jnp.zeros_like(acc_s_ref)

    yt = yt_ref[...].astype(jnp.float32)
    yp = yp_ref[...].astype(jnp.float32)

    prod = yt * yp               # -> intersection
    tot = yt + yp                # -> sum(y_pred) + sum(y_true)

    def _fold(x):
        # Fold the tile down to a vreg-shaped partial (pure VPU adds); the
        # expensive cross-lane/sublane reduce happens once, at finalize.
        if tile_rows % 8 == 0:
            return x.reshape(tile_rows // 8, 8, LANES).sum(axis=0)
        # Tiny inputs only (tile == full array, rows not a multiple of 8).
        return x.sum(axis=0, keepdims=True)

    def _accumulate(p, t):
        acc_i_ref[...] = acc_i_ref[...] + _fold(p)
        acc_s_ref[...] = acc_s_ref[...] + _fold(t)

    if need_mask:
        # Only the final (partial) block needs the row mask; every other step
        # takes the unmasked path.
        @pl.when(j < nsteps - 1)
        def _full():
            _accumulate(prod, tot)

        @pl.when(j == nsteps - 1)
        def _tail():
            row_idx = (jax.lax.broadcasted_iota(jnp.int32, (tile_rows, LANES), 0)
                       + j * tile_rows)
            valid = row_idx < rows
            _accumulate(jnp.where(valid, prod, 0.0),
                        jnp.where(valid, tot, 0.0))
    else:
        _accumulate(prod, tot)

    @pl.when(j == nsteps - 1)
    def _finalize():
        out_ref[0, 0] = jnp.sum(acc_i_ref[...])
        out_ref[0, 1] = jnp.sum(acc_s_ref[...])


def _dice_from_sums(intersection, total, smooth):
    smooth = jnp.float32(smooth)
    return 1.0 - (2.0 * intersection + smooth) / (total + smooth + jnp.float32(1e-4))


def dice_loss(y_true, y_pred, smooth: float = 0.0, *,
              row_tile: int = ROW_TILE,
              small_input_elements: int = DEFAULT_SMALL_INPUT):
    """Pallas implementation of DiceLoss.forward (returns a scalar f32)."""
    yt = jnp.ravel(y_true)
    yp = jnp.ravel(y_pred)
    n = yt.shape[0]
    aligned = (n // LANES) * LANES

    # Small-input fast path: fixed pallas_call/grid overhead dominates.
    if n <= small_input_elements or aligned == 0:
        ytf = yt.astype(jnp.float32)
        ypf = yp.astype(jnp.float32)
        return _dice_from_sums(jnp.vdot(ypf, ytf), ypf.sum() + ytf.sum(), smooth)

    # Lane-dense (rows, 128) view of the 128-aligned prefix. No jnp.pad copy:
    # the (<=127-element) tail is handled in the epilogue below.
    rows = aligned // LANES
    yt2 = (yt if aligned == n else yt[:aligned]).reshape(rows, LANES)
    yp2 = (yp if aligned == n else yp[:aligned]).reshape(rows, LANES)

    tile_rows = min(row_tile, rows)
    nsteps = -(-rows // tile_rows)
    need_mask = (rows % tile_rows) != 0        # only the last block is partial
    acc_rows = 8 if tile_rows % 8 == 0 else 1

    kernel = functools.partial(
        _dice_partial_kernel,
        rows=rows,
        tile_rows=tile_rows,
        nsteps=nsteps,
        need_mask=need_mask,
    )

    partials = pl.pallas_call(
        kernel,
        out_shape=jax.ShapeDtypeStruct((1, 2), jnp.float32),
        grid_spec=pltpu.PrefetchScalarGridSpec(
            num_scalar_prefetch=0,
            grid=(nsteps,),
            in_specs=[
                pl.BlockSpec((tile_rows, LANES), lambda j: (j, 0)),
                pl.BlockSpec((tile_rows, LANES), lambda j: (j, 0)),
            ],
            out_specs=pl.BlockSpec((1, 2), lambda j: (0, 0),
                                   memory_space=pltpu.SMEM),
            scratch_shapes=[
                pltpu.VMEM((acc_rows, LANES), jnp.float32),
                pltpu.VMEM((acc_rows, LANES), jnp.float32),
            ],
        ),
        compiler_params=pltpu.CompilerParams(
            dimension_semantics=("arbitrary",)),
    )(yt2, yp2)

    intersection = partials[0, 0]
    total = partials[0, 1]

    if aligned != n:
        # <=127 leftover elements: fold them in with a tiny XLA epilogue.
        tail_t = yt[aligned:].astype(jnp.float32)
        tail_p = yp[aligned:].astype(jnp.float32)
        intersection = intersection + jnp.vdot(tail_p, tail_t)
        total = total + tail_p.sum() + tail_t.sum()

    return _dice_from_sums(intersection, total, smooth)


def dice_loss_ref(y_true, y_pred, smooth: float = 0.0):
    yt = jnp.ravel(y_true).astype(jnp.float32)
    yp = jnp.ravel(y_pred).astype(jnp.float32)
    inter = yp @ yt
    s = yp.sum() + yt.sum()
    return 1.0 - (2.0 * inter + smooth) / (s + smooth + 1e-4)


if __name__ == "__main__":
    key = jax.random.PRNGKey(0)
    k1, k2 = jax.random.split(key)

    # Test 1: small NCHW segmentation-style inputs (batch=2, channels=4, 16x16),
    # 128-aligned; force the Pallas path despite the small-input fast path.
    shape = (2, 4, 16, 16)
    y_true = (jax.random.uniform(k1, shape) > 0.5).astype(jnp.float32)
    y_pred = jax.random.uniform(k2, shape, dtype=jnp.float32)
    out = jax.block_until_ready(
        dice_loss(y_true, y_pred, smooth=1.0, small_input_elements=0))
    ref = dice_loss_ref(y_true, y_pred, smooth=1.0)
    assert jnp.allclose(out, ref, atol=1e-5, rtol=1e-5), (out, ref)

    # Test 2: odd total size -> aligned prefix in-kernel + tail in the epilogue.
    shape2 = (3, 5, 17, 13)
    y_true2 = (jax.random.uniform(k1, shape2) > 0.5).astype(jnp.float32)
    y_pred2 = jax.random.uniform(k2, shape2, dtype=jnp.float32)
    out2 = jax.block_until_ready(
        dice_loss(y_true2, y_pred2, smooth=0.0, small_input_elements=0))
    ref2 = dice_loss_ref(y_true2, y_pred2, smooth=0.0)
    assert jnp.allclose(out2, ref2, atol=1e-5, rtol=1e-5), (out2, ref2)

    # Test 3: multi-step grid with a partial (masked) last block.
    shape3 = (2, 4, 20, 16)   # 2560 elements -> 20 rows of 128
    y_true3 = (jax.random.uniform(k1, shape3) > 0.5).astype(jnp.float32)
    y_pred3 = jax.random.uniform(k2, shape3, dtype=jnp.float32)
    out3 = jax.block_until_ready(
        dice_loss(y_true3, y_pred3, smooth=1.0, row_tile=16,
                  small_input_elements=0))
    ref3 = dice_loss_ref(y_true3, y_pred3, smooth=1.0)
    assert jnp.allclose(out3, ref3, atol=1e-5, rtol=1e-5), (out3, ref3)

    print("KERNEL_OK")
</pallas_src>

<mosaic_0001>
module attributes {stable_mosaic.version = 11 : i64} {
  func.func @_dice_partial_kernel(%arg0: i32, %arg1: memref<16x128xf32, #tpu.memory_space<vmem>>, %arg2: memref<16x128xf32, #tpu.memory_space<vmem>>, %arg3: memref<1x2xf32, #tpu.memory_space<smem>>, %arg4: memref<8x128xf32, #tpu.memory_space<vmem>>, %arg5: memref<8x128xf32, #tpu.memory_space<vmem>>) attributes {dimension_semantics = [#tpu.dimension_semantics<arbitrary>], iteration_bounds = array<i64: 1>, scalar_prefetch = 0 : i64, scratch_operands = 2 : i64, tpu.core_type = #tpu.core_type<tc>, window_params = [{transform_indices = @transform_0, window_bounds = array<i64: 16, 128>}, {transform_indices = @transform_1, window_bounds = array<i64: 16, 128>}, {transform_indices = @transform_2, window_bounds = array<i64: 1, 2>}]} {
    %c0_i32 = arith.constant 0 : i32
    %0 = arith.cmpi eq, %arg0, %c0_i32 : i32
    %1 = arith.extui %0 : i1 to i32
    %c0_i32_0 = arith.constant 0 : i32
    %2 = arith.cmpi ne, %1, %c0_i32_0 : i32
    scf.if %2 {
      %cst_15 = arith.constant 0.000000e+00 : f32
      %20 = vector.broadcast %cst_15 : f32 to vector<8x128xf32>
      %c0_16 = arith.constant 0 : index
      %c0_17 = arith.constant 0 : index
      %21 = vector.load %arg4[%c0_16, %c0_17] : memref<8x128xf32, #tpu.memory_space<vmem>>, vector<8x128xf32>
      tpu.vector_store %arg4[%c0_16, %c0_17], %20 {strides = array<i32>} : memref<8x128xf32, #tpu.memory_space<vmem>>, vector<8x128xf32>,
      %cst_18 = arith.constant 0.000000e+00 : f32
      %22 = vector.broadcast %cst_18 : f32 to vector<8x128xf32>
      %c0_19 = arith.constant 0 : index
      %c0_20 = arith.constant 0 : index
      %23 = vector.load %arg5[%c0_19, %c0_20] : memref<8x128xf32, #tpu.memory_space<vmem>>, vector<8x128xf32>
      tpu.vector_store %arg5[%c0_19, %c0_20], %22 {strides = array<i32>} : memref<8x128xf32, #tpu.memory_space<vmem>>, vector<8x128xf32>,
    } else {
    }
    %c0 = arith.constant 0 : index
    %c0_1 = arith.constant 0 : index
    %3 = vector.load %arg1[%c0, %c0_1] : memref<16x128xf32, #tpu.memory_space<vmem>>, vector<16x128xf32>
    %c0_2 = arith.constant 0 : index
    %c0_3 = arith.constant 0 : index
    %4 = vector.load %arg2[%c0_2, %c0_3] : memref<16x128xf32, #tpu.memory_space<vmem>>, vector<16x128xf32>
    %5 = arith.mulf %3, %4 : vector<16x128xf32>
    %6 = arith.addf %3, %4 : vector<16x128xf32>
    %c0_4 = arith.constant 0 : index
    %c0_5 = arith.constant 0 : index
    %7 = vector.load %arg4[%c0_4, %c0_5] : memref<8x128xf32, #tpu.memory_space<vmem>>, vector<8x128xf32>
    %8 = vector.shape_cast %5 : vector<16x128xf32> to vector<2x8x128xf32>
    %cst = arith.constant dense<0.000000e+00> : vector<8x128xf32>
    %9 = vector.multi_reduction <add>, %8, %cst [0] : vector<2x8x128xf32> to vector<8x128xf32>
    %10 = arith.addf %7, %9 : vector<8x128xf32>
    %c0_6 = arith.constant 0 : index
    %c0_7 = arith.constant 0 : index
    %11 = vector.load %arg4[%c0_6, %c0_7] : memref<8x128xf32, #tpu.memory_space<vmem>>, vector<8x128xf32>
    tpu.vector_store %arg4[%c0_6, %c0_7], %10 {strides = array<i32>} : memref<8x128xf32, #tpu.memory_space<vmem>>, vector<8x128xf32>,
    %c0_8 = arith.constant 0 : index
    %c0_9 = arith.constant 0 : index
    %12 = vector.load %arg5[%c0_8, %c0_9] : memref<8x128xf32, #tpu.memory_space<vmem>>, vector<8x128xf32>
    %13 = vector.shape_cast %6 : vector<16x128xf32> to vector<2x8x128xf32>
    %cst_10 = arith.constant dense<0.000000e+00> : vector<8x128xf32>
    %14 = vector.multi_reduction <add>, %13, %cst_10 [0] : vector<2x8x128xf32> to vector<8x128xf32>
    %15 = arith.addf %12, %14 : vector<8x128xf32>
    %c0_11 = arith.constant 0 : index
    %c0_12 = arith.constant 0 : index
    %16 = vector.load %arg5[%c0_11, %c0_12] : memref<8x128xf32, #tpu.memory_space<vmem>>, vector<8x128xf32>
    tpu.vector_store %arg5[%c0_11, %c0_12], %15 {strides = array<i32>} : memref<8x128xf32, #tpu.memory_space<vmem>>, vector<8x128xf32>,
    %c0_i32_13 = arith.constant 0 : i32
    %17 = arith.cmpi eq, %arg0, %c0_i32_13 : i32
    %18 = arith.extui %17 : i1 to i32
    %c0_i32_14 = arith.constant 0 : i32
    %19 = arith.cmpi ne, %18, %c0_i32_14 : i32
    scf.if %19 {
      %c0_15 = arith.constant 0 : index
      %c0_16 = arith.constant 0 : index
      %20 = vector.load %arg4[%c0_15, %c0_16] : memref<8x128xf32, #tpu.memory_space<vmem>>, vector<8x128xf32>
      %21 = vector.shape_cast %20 : vector<8x128xf32> to vector<1x8x128xf32>
      %cst_17 = arith.constant dense<0.000000e+00> : vector<1xf32>
      %22 = vector.multi_reduction <add>, %21, %cst_17 [1, 2] : vector<1x8x128xf32> to vector<1xf32>
      %23 = vector.shape_cast %22 : vector<1xf32> to vector<1x1x1xf32>
      %24 = vector.extract %23[0, 0, 0] : f32 from vector<1x1x1xf32>
      %c0_18 = arith.constant 0 : index
      %c0_19 = arith.constant 0 : index
      %25 = memref.load %arg3[%c0_18, %c0_19] : memref<1x2xf32, #tpu.memory_space<smem>>
      memref.store %24, %arg3[%c0_18, %c0_19] : memref<1x2xf32, #tpu.memory_space<smem>>
      %c0_20 = arith.constant 0 : index
      %c0_21 = arith.constant 0 : index
      %26 = vector.load %arg5[%c0_20, %c0_21] : memref<8x128xf32, #tpu.memory_space<vmem>>, vector<8x128xf32>
      %27 = vector.shape_cast %26 : vector<8x128xf32> to vector<1x8x128xf32>
      %cst_22 = arith.constant dense<0.000000e+00> : vector<1xf32>
      %28 = vector.multi_reduction <add>, %27, %cst_22 [1, 2] : vector<1x8x128xf32> to vector<1xf32>
      %29 = vector.shape_cast %28 : vector<1xf32> to vector<1x1x1xf32>
      %30 = vector.extract %29[0, 0, 0] : f32 from vector<1x1x1xf32>
      %c0_23 = arith.constant 0 : index
      %c1 = arith.constant 1 : index
      %31 = memref.load %arg3[%c0_23, %c1] : memref<1x2xf32, #tpu.memory_space<smem>>
      memref.store %30, %arg3[%c0_23, %c1] : memref<1x2xf32, #tpu.memory_space<smem>>
    } else {
    }
    return
  }
  func.func @transform_0(%arg0: i32) -> (i32, i32) {
    %c0_i32 = arith.constant 0 : i32
    %c0_i32_0 = arith.constant 0 : i32
    return %arg0, %c0_i32 : i32, i32
  }
  func.func @transform_1(%arg0: i32) -> (i32, i32) {
    %c0_i32 = arith.constant 0 : i32
    %c0_i32_0 = arith.constant 0 : i32
    return %arg0, %c0_i32 : i32, i32
  }
  func.func @transform_2(%arg0: i32) -> (i32, i32) {
    %c0_i32 = arith.constant 0 : i32
    %c0_i32_0 = arith.constant 0 : i32
    %c0_i32_1 = arith.constant 0 : i32
    return %c0_i32, %c0_i32_0 : i32, i32
  }
}

</mosaic_0001>

<bundles_post_ra>
// kernel: tpu_custom_call.1
= control target key start
LH: loop header
LB: loop body
LE: loop exit
PB: predicated region body
PF: predicated region fallthrough
CT: control target
= control target key end

     0   :  { %7 = vsyncpa [#allocation5], 0  ;;  %s229_s0 = inlined_call_operand.hbm [shape: f32[16,128], index: 0, kind: input, shape index: {}]   ;;  %s230_s1 = inlined_call_operand.hbm [shape: f32[16,128], index: 1, kind: input, shape index: {}]   ;;  %s231_s2 = inlined_call_operand.hbm [shape: f32[1,2], index: 2, kind: output, shape index: {}]  }
   0x1   :  { %8 = vsyncpa [#allocation8], 0 }
   0x2   :  { %9 = vsyncpa [#allocation6], 0  ;;  %s173_s9 = smov [#allocation4]   ;;  %s113_s13 = scalar_lea.hbm %s229_s0, 256 }
   0x3   :  { %s15_s10 = sshll.u32 %s173_s9, 4  ;;  %p114_p0 = scmp.ne.s32.totalorder %s229_s0, %s113_s13  ;;  %s16_s10 = int_to_ptr.vmem [resolvable:$true] %s15_s10 }
   0x4   :  { %p117_p1 = scmp.lt.u32.totalorder %s113_s13, %s229_s0 }
   0x6   :  { %p119_p2 = pnand %p117_p1, %p114_p0 }
   0x8   :  { %122 = shalt.err (!%p119_p2)
}
   0x9   :  { %s123_s18 = scalar_lea.vmem %s16_s10, 256  ;;  %p128_p4 = scmp.lt.s32.totalorder %s16_s10, %s16_s10 }
   0xa   :  { %p124_p3 = scmp.ne.s32.totalorder %s16_s10, %s123_s18  ;;  %p129_p5 = scmp.lt.s32.totalorder %s123_s18, %s123_s18 }
   0xc   :  { %p130_p6 = por %p129_p5, %p128_p4 }
   0xe   :  { %p131_p7 = pnand %p130_p6, %p124_p3 }
  0x10   :  { %134 = shalt.err (!%p131_p7)
}
  0x11   :  { %s174_s19 = smov 128   ;;  %s175_s20 = smov 8  }
  0x12   :  { %21 = dma.hbm_to_vmem [thread:$0]  %s229_s0, 256, %s16_s10, [#allocation5], %s174_s19, %s174_s19, %s175_s20  }
  0x13   :  { %s176_s23 = smov [#allocation7]   ;;  %s135_s27 = scalar_lea.hbm %s230_s1, 256 }
  0x14   :  { %s27_s24 = sshll.u32 %s176_s23, 4  ;;  %p136_p8 = scmp.ne.s32.totalorder %s230_s1, %s135_s27  ;;  %s28_s24 = int_to_ptr.vmem [resolvable:$true] %s27_s24 }
  0x15   :  { %p139_p9 = scmp.lt.u32.totalorder %s135_s27, %s230_s1 }
  0x17   :  { %p141_p10 = pnand %p139_p9, %p136_p8 }
  0x19   :  { %144 = shalt.err (!%p141_p10)
}
  0x1a   :  { %s145_s4 = scalar_lea.vmem %s28_s24, 256  ;;  %p150_p12 = scmp.lt.s32.totalorder %s28_s24, %s28_s24 }
  0x1b   :  { %p146_p11 = scmp.ne.s32.totalorder %s28_s24, %s145_s4  ;;  %p151_p13 = scmp.lt.s32.totalorder %s145_s4, %s145_s4 }
  0x1d   :  { %p152_p0 = por %p151_p13, %p150_p12 }
  0x1f   :  { %p153_p1 = pnand %p152_p0, %p146_p11 }
  0x21   :  { %156 = shalt.err (!%p153_p1)
}
  0x22   :  { %33 = dma.hbm_to_vmem [thread:$0]  %s230_s1, 256, %s28_s24, [#allocation8], %s174_s19, %s174_s19, %s175_s20  }
  0x23   :  { %167 = dma.done.wait [#allocation5], 256  }
  0x24   :  { %168 = vsyncadd [#allocation5], 4294967040 }
  0x25   :  { %169 = dma.done.wait [#allocation8], 256  }
  0x26   :  { %170 = vsyncadd [#allocation8], 4294967040  ;;  %v46_v0 = vld [vmem:[#allocation4] sm:$0xff]  ;;  %v47_v1 = vld [vmem:[#allocation4 + $0x8] sm:$0xff]  ;;  %s157_s9 = scalar_lea.hbm %s231_s2, 16 }
  0x27   :  { %v48_v2 = vld [vmem:[#allocation7] sm:$0xff]  ;;  %v49_v3 = vld [vmem:[#allocation7 + $0x8] sm:$0xff]  ;;  %p158_p2 = scmp.ne.s32.totalorder %s231_s2, %s157_s9  ;;  %p161_p3 = scmp.lt.u32.totalorder %s157_s9, %s231_s2 }
  0x28   :  { %v50_v4 = vmul.f32 %v48_v2, %v46_v0  ;;  %v51_v5 = vmul.f32 %v49_v3, %v47_v1  ;;  %v52_v6 = vadd.f32 %v48_v2, %v46_v0  ;;  %v53_v7 = vadd.f32 %v49_v3, %v47_v1 }
  0x29   :  { %p163_p4 = pnand %p161_p3, %p158_p2 }
  0x2a   :  { %v55_v8 = vadd.f32 %v51_v5, %v50_v4  ;;  %v59_v9 = vadd.f32 %v53_v7, %v52_v6 }
  0x2c   :  { %66 = vadd.xlane.f32.xlu0 %v55_v8 }
  0x30   :  { %78 = vadd.xlane.f32.xlu0 %v59_v9 }
  0xb9   :  { %v67_v10 = vpop.xlane.xlu0 %66 }
  0xba   :  { %v68_v11 = vrot.slane %v67_v10, 4 }
  0xbc   :  { %v69_v12 = vadd.f32 %v68_v11, %v67_v10 }
  0xbd   :  { %v79_v13 = vpop.xlane.xlu0 %78 }
  0xbe   :  { %v70_v14 = vrot.slane %v69_v12, 2  ;;  %v80_v15 = vrot.slane %v79_v13, 4 }
  0xc0   :  { %v81_v16 = vadd.f32 %v80_v15, %v79_v13  ;;  %v71_v17 = vadd.f32 %v70_v14, %v69_v12 }
  0xc2   :  { %v82_v18 = vrot.slane %v81_v16, 2  ;;  %v72_v19 = vrot.slane %v71_v17, 1 }
  0xc4   :  { %v83_v20 = vadd.f32 %v82_v18, %v81_v16  ;;  %v73_v21 = vadd.f32 %v72_v19, %v71_v17 }
  0xc6   :  { %104 = vpush %v73_v21  ;;  %v84_v22 = vrot.slane %v83_v20, 1 }
  0xc8   :  { %v85_v23 = vadd.f32 %v84_v22, %v83_v20 }
  0xca   :  { %106 = vpush %v85_v23 }
  0xf7   :  { %s105_s1 = spop %104 }
  0xf8   :  { %76 = sst [smem:[#allocation9]] %s105_s1 }
  0xfb   :  { %s107_s6 = spop %106 }
  0xfc   :  { %88 = sst [smem:[#allocation9 + $0x1]] %s107_s6 }
  0xfd   :  { %166 = shalt.err (!%p163_p4)
}
  0xfe   :  { %s177_s14 = smov [#allocation9]  }
  0xff   :  { %96 = dma.smem_to_hbm %s177_s14, 16, %s231_s2, [#allocation6]  }
 0x100   :  { %171 = dma.done.wait [#allocation6], 16  }
 0x101   :  { %172 = vsyncadd [#allocation6], 4294967280 }
 0x102   :  { %100 = sfence }
 0x103   :  { %101 = vsyncpa [#allocation5], 1 }
 0x104   :  { %102 = vsyncpa [#allocation8], 1 }
 0x105   :  { %103 = vsyncpa [#allocation6], 1 }

</bundles_post_ra>
